<compile_context>
chip_gen: v7x
topology: tpu7x:2x2x1
jax: 0.10.0
libtpu: 0.0.40
codegen_flags: <defaults>
</compile_context>

<pallas_src>
import functools

import jax
import jax.numpy as jnp
from jax import lax
from jax.experimental import pallas as pl
from jax.experimental.pallas import tpu as pltpu


def _extract_patches(x, patch_size):
    """PyTorch PatchExtractor equivalent: NCHW -> (B, N, C*p*p), channel-major."""
    B, C, H, W = x.shape
    assert H % patch_size == 0 and W % patch_size == 0
    nh, nw = H // patch_size, W // patch_size
    # (B, C, nh, p, nw, p) -> (B, nh, nw, C, p, p) -> (B, nh*nw, C*p*p)
    x = x.reshape(B, C, nh, patch_size, nw, patch_size)
    x = jnp.transpose(x, (0, 2, 4, 1, 3, 5))
    return x.reshape(B, nh * nw, C * patch_size * patch_size)


def _embed_kernel(p_ref, w_ref, b_ref, cls_ref, pos_ref, o_ref):
    """TB batch elements per step: project N patches each, add bias + pos,
    prepend the class token, and write the final sequence rows.

    p_ref:   (TB, N, K)          bf16  patches
    w_ref:   (latent, K)         bf16  nn.Linear weight, native layout (resident)
    b_ref:   (1, latent)         f32   nn.Linear bias (resident)
    cls_ref: (TB, 1, latent)     f32   class tokens
    pos_ref: (TB, 1, latent)     f32   positional embedding (broadcast over seq)
    o_ref:   (TB, N+1, latent)   f32   final embeddings
    """
    tb = p_ref.shape[0]
    bias = b_ref[...]                                       # (1, latent) f32
    for t in range(tb):                                     # static, tiny unroll
        pos = pos_ref[t]                                    # (1, latent) f32
        # (N, K) @ (latent, K)^T -> (N, latent), f32 accumulation on the MXU.
        proj = lax.dot_general(
            p_ref[t], w_ref[...],
            dimension_numbers=(((1,), (1,)), ((), ())),
            preferred_element_type=jnp.float32)
        o_ref[t, 1:, :] = (proj + bias + pos).astype(o_ref.dtype)
        # Row 0 = class token + positional embedding.
        o_ref[t, 0:1, :] = (cls_ref[t] + pos).astype(o_ref.dtype)


def _vmem_cap_bytes():
    # Per-generation physical VMEM (v5e/v6e: 128 MiB, v7x: 64 MiB per core).
    # Fall back to the smallest (v7x) if the query is unavailable.
    try:
        cap = getattr(pltpu.get_tpu_info(), "vmem_capacity_bytes", None)
        if cap:
            return int(cap)
    except Exception:
        pass
    return 64 << 20


def input_embedding(x, w, b, class_token, pos_embedding, *, patch_size):
    """Forward pass of InputEmbedding.

    x:             (B, C, H, W)   f32 NCHW image batch
    w:             (latent, K)    f32 nn.Linear weight (K = C*p*p)
    b:             (latent,)      f32 nn.Linear bias
    class_token:   (B, 1, latent) f32
    pos_embedding: (B, 1, latent) f32 (broadcast over the sequence, per module)
    returns:       (B, N+1, latent) f32
    """
    B, C, H, W = x.shape
    latent, K = w.shape
    nh, nw = H // patch_size, W // patch_size
    N = nh * nw
    assert K == C * patch_size * patch_size

    # Patch extraction. The bf16 convert fuses into the same XLA copy fusion as
    # the transpose, so (B, N, K) is materialized once, at half the f32 bytes.
    # TODO(synk): eliminate this HBM materialization entirely by fusing the
    # extraction into the pallas input DMA (allow_input_fusion on this operand,
    # or an in-kernel gather from x held in memory_space=pl.ANY).
    patches = _extract_patches(x, patch_size).astype(jnp.bfloat16)   # (B, N, K)

    w_bf16 = w.astype(jnp.bfloat16)                 # tiny; native (latent, K)
    b2 = b.reshape(1, latent).astype(jnp.float32)   # (1, latent)

    # Batch elements per grid step: aim for ~512 projected rows per step to
    # amortize per-step pipeline overhead (v6e feedback), while keeping >= 2
    # parallel grid steps whenever B >= 2 so both v7x TensorCores get work.
    tb = max(1, min(B, 512 // max(N, 1)))
    if B >= 2:
        tb = max(1, min(tb, B // 2))
    num_b_blocks = pl.cdiv(B, tb)

    # Exact VMEM accounting (+ margin): double-buffered per-step blocks,
    # single-buffered resident weight / bias.
    vmem_bytes = (
        2 * tb * N * K * 2                 # patches block  x2 buffers, bf16
        + 2 * tb * (N + 1) * latent * 4    # output block   x2 buffers, f32
        + latent * K * 2                   # weight, Buffered(1), bf16
        + latent * 4                       # bias,   Buffered(1), f32
        + 2 * 2 * tb * latent * 4          # class token + pos, x2 buffers
    )
    vmem_limit = int(min(max(int(vmem_bytes * 1.5) + (1 << 20), 4 << 20),
                         int(0.75 * _vmem_cap_bytes())))

    cost = pl.CostEstimate(
        flops=2 * B * N * K * latent,
        transcendentals=0,
        bytes_accessed=(B * N * K * 2                 # patches (bf16)
                        + latent * K * 2              # weight
                        + B * (N + 1) * latent * 4    # output (f32)
                        + 2 * B * latent * 4),        # class token + pos
    )

    out = pl.pallas_call(
        _embed_kernel,
        out_shape=jax.ShapeDtypeStruct((B, N + 1, latent), jnp.float32),
        grid_spec=pltpu.PrefetchScalarGridSpec(
            num_scalar_prefetch=0,
            grid=(num_b_blocks,),
            in_specs=[
                # TODO(synk): sweep pipeline_mode=pl.Buffered(3) here once the
                # kernel is purely HBM-bound.
                pl.BlockSpec((tb, N, K), lambda i: (i, 0, 0)),
                pl.BlockSpec((latent, K), lambda i: (0, 0),
                             pipeline_mode=pl.Buffered(1)),       # resident W
                pl.BlockSpec((1, latent), lambda i: (0, 0),
                             pipeline_mode=pl.Buffered(1)),       # resident bias
                pl.BlockSpec((tb, 1, latent), lambda i: (i, 0, 0)),
                pl.BlockSpec((tb, 1, latent), lambda i: (i, 0, 0)),
            ],
            out_specs=pl.BlockSpec((tb, N + 1, latent), lambda i: (i, 0, 0)),
        ),
        compiler_params=pltpu.CompilerParams(
            dimension_semantics=("parallel",),
            vmem_limit_bytes=vmem_limit,
        ),
        cost_estimate=cost,
    )(patches, w_bf16, b2, class_token, pos_embedding)
    return out


def _reference(x, w, b, class_token, pos_embedding, *, patch_size):
    patches = _extract_patches(x, patch_size)
    proj = jnp.einsum("bnk,lk->bnl", patches, w) + b
    seq = jnp.concatenate([class_token, proj], axis=1)
    return seq + pos_embedding


if __name__ == "__main__":
    # Small, module-consistent shapes:
    #   batch=2, channels=3, H=W=16, patch_size=4 -> N=16 patches,
    #   input_size = 4*4*3 = 48, latent_size=32.
    patch_size = 4
    n_channels = 3
    H = W = 16
    batch = 2
    latent = 32
    input_size = patch_size * patch_size * n_channels

    key = jax.random.PRNGKey(0)
    kx, kw, kb, kc, kp = jax.random.split(key, 5)
    x = jax.random.normal(kx, (batch, n_channels, H, W), dtype=jnp.float32)
    w = jax.random.normal(kw, (latent, input_size), dtype=jnp.float32) * 0.02
    b = jax.random.normal(kb, (latent,), dtype=jnp.float32) * 0.02
    class_token = jax.random.normal(kc, (batch, 1, latent), dtype=jnp.float32)
    pos_embedding = jax.random.normal(kp, (batch, 1, latent), dtype=jnp.float32)

    embed_fn = jax.jit(functools.partial(input_embedding, patch_size=patch_size))
    out = jax.block_until_ready(embed_fn(x, w, b, class_token, pos_embedding))

    ref = _reference(x, w, b, class_token, pos_embedding, patch_size=patch_size)
    assert out.shape == (batch, (H // patch_size) * (W // patch_size) + 1, latent)
    # Kernel feeds the MXU in bf16 (f32 accumulation); tolerance reflects bf16
    # rounding of patches/weight vs. the f32 reference.
    assert jnp.allclose(out, ref, atol=2e-2, rtol=2e-2), "mismatch vs reference"

    print("KERNEL_OK")
</pallas_src>

<mosaic_0001>
module attributes {stable_mosaic.version = 11 : i64} {
  func.func @_embed_kernel(%arg0: i32, %arg1: memref<1x16x48xbf16, #tpu.memory_space<vmem>>, %arg2: memref<32x48xbf16, #tpu.memory_space<vmem>>, %arg3: memref<1x32xf32, #tpu.memory_space<vmem>>, %arg4: memref<1x1x32xf32, #tpu.memory_space<vmem>>, %arg5: memref<1x1x32xf32, #tpu.memory_space<vmem>>, %arg6: memref<1x17x32xf32, #tpu.memory_space<vmem>>) attributes {dimension_semantics = [#tpu.dimension_semantics<parallel>], iteration_bounds = array<i64: 2>, scalar_prefetch = 0 : i64, scratch_operands = 0 : i64, tpu.core_type = #tpu.core_type<tc>, window_params = [{transform_indices = @transform_0, window_bounds = array<i64: 1, 16, 48>}, {pipeline_mode = #tpu.pipeline_mode<synchronous>, transform_indices = @transform_1, window_bounds = array<i64: 32, 48>}, {pipeline_mode = #tpu.pipeline_mode<synchronous>, transform_indices = @transform_2, window_bounds = array<i64: 1, 32>}, {transform_indices = @transform_3, window_bounds = array<i64: 1, 1, 32>}, {transform_indices = @transform_4, window_bounds = array<i64: 1, 1, 32>}, {transform_indices = @transform_5, window_bounds = array<i64: 1, 17, 32>}]} {
    %c0 = arith.constant 0 : index
    %c0_0 = arith.constant 0 : index
    %0 = vector.load %arg3[%c0, %c0_0] : memref<1x32xf32, #tpu.memory_space<vmem>>, vector<1x32xf32>
    %c0_1 = arith.constant 0 : index
    %c0_2 = arith.constant 0 : index
    %c0_3 = arith.constant 0 : index
    %1 = vector.load %arg5[%c0_1, %c0_2, %c0_3] : memref<1x1x32xf32, #tpu.memory_space<vmem>>, vector<1x1x32xf32>
    %2 = vector.shape_cast %1 : vector<1x1x32xf32> to vector<1x32xf32>
    %c0_4 = arith.constant 0 : index
    %c0_5 = arith.constant 0 : index
    %c0_6 = arith.constant 0 : index
    %3 = vector.load %arg1[%c0_4, %c0_5, %c0_6] : memref<1x16x48xbf16, #tpu.memory_space<vmem>>, vector<1x16x48xbf16>
    %4 = vector.shape_cast %3 : vector<1x16x48xbf16> to vector<16x48xbf16>
    %c0_7 = arith.constant 0 : index
    %c0_8 = arith.constant 0 : index
    %5 = vector.load %arg2[%c0_7, %c0_8] : memref<32x48xbf16, #tpu.memory_space<vmem>>, vector<32x48xbf16>
    %cst = arith.constant dense<0.000000e+00> : vector<16x32xf32>
    %6 = tpu.matmul %4, %5, %cst {dimension_numbers = #tpu.dot_dimension_numbers<[1], [1], [0], [0], [0, 0, 1, 0], [], []>} : vector<16x48xbf16>, vector<32x48xbf16>, vector<16x32xf32> -> vector<16x32xf32>
    %7 = vector.broadcast %0 : vector<1x32xf32> to vector<16x32xf32>
    %8 = arith.addf %6, %7 : vector<16x32xf32>
    %9 = vector.broadcast %2 : vector<1x32xf32> to vector<16x32xf32>
    %10 = arith.addf %8, %9 : vector<16x32xf32>
    %c0_9 = arith.constant 0 : index
    %c1 = arith.constant 1 : index
    %c0_10 = arith.constant 0 : index
    %11 = vector.load %arg6[%c0_9, %c1, %c0_10] : memref<1x17x32xf32, #tpu.memory_space<vmem>>, vector<1x16x32xf32>
    %12 = vector.shape_cast %11 : vector<1x16x32xf32> to vector<16x32xf32>
    %13 = vector.shape_cast %10 : vector<16x32xf32> to vector<1x16x32xf32>
    tpu.vector_store %arg6[%c0_9, %c1, %c0_10], %13 {strides = array<i32>} : memref<1x17x32xf32, #tpu.memory_space<vmem>>, vector<1x16x32xf32>,
    %c0_11 = arith.constant 0 : index
    %c0_12 = arith.constant 0 : index
    %c0_13 = arith.constant 0 : index
    %14 = vector.load %arg4[%c0_11, %c0_12, %c0_13] : memref<1x1x32xf32, #tpu.memory_space<vmem>>, vector<1x1x32xf32>
    %15 = vector.shape_cast %14 : vector<1x1x32xf32> to vector<1x32xf32>
    %16 = arith.addf %15, %2 : vector<1x32xf32>
    %c0_14 = arith.constant 0 : index
    %c0_15 = arith.constant 0 : index
    %c0_16 = arith.constant 0 : index
    %17 = vector.load %arg6[%c0_14, %c0_15, %c0_16] : memref<1x17x32xf32, #tpu.memory_space<vmem>>, vector<1x1x32xf32>
    %18 = vector.shape_cast %17 : vector<1x1x32xf32> to vector<1x32xf32>
    %19 = vector.shape_cast %16 : vector<1x32xf32> to vector<1x1x32xf32>
    tpu.vector_store %arg6[%c0_14, %c0_15, %c0_16], %19 {strides = array<i32>} : memref<1x17x32xf32, #tpu.memory_space<vmem>>, vector<1x1x32xf32>,
    return
  }
  func.func @transform_0(%arg0: i32) -> (i32, i32, i32) {
    %c0_i32 = arith.constant 0 : i32
    %c0_i32_0 = arith.constant 0 : i32
    %c0_i32_1 = arith.constant 0 : i32
    return %arg0, %c0_i32, %c0_i32_0 : i32, i32, i32
  }
  func.func @transform_1(%arg0: i32) -> (i32, i32) {
    %c0_i32 = arith.constant 0 : i32
    %c0_i32_0 = arith.constant 0 : i32
    %c0_i32_1 = arith.constant 0 : i32
    return %c0_i32, %c0_i32_0 : i32, i32
  }
  func.func @transform_2(%arg0: i32) -> (i32, i32) {
    %c0_i32 = arith.constant 0 : i32
    %c0_i32_0 = arith.constant 0 : i32
    %c0_i32_1 = arith.constant 0 : i32
    return %c0_i32, %c0_i32_0 : i32, i32
  }
  func.func @transform_3(%arg0: i32) -> (i32, i32, i32) {
    %c0_i32 = arith.constant 0 : i32
    %c0_i32_0 = arith.constant 0 : i32
    %c0_i32_1 = arith.constant 0 : i32
    return %arg0, %c0_i32, %c0_i32_0 : i32, i32, i32
  }
  func.func @transform_4(%arg0: i32) -> (i32, i32, i32) {
    %c0_i32 = arith.constant 0 : i32
    %c0_i32_0 = arith.constant 0 : i32
    %c0_i32_1 = arith.constant 0 : i32
    return %arg0, %c0_i32, %c0_i32_0 : i32, i32, i32
  }
  func.func @transform_5(%arg0: i32) -> (i32, i32, i32) {
    %c0_i32 = arith.constant 0 : i32
    %c0_i32_0 = arith.constant 0 : i32
    %c0_i32_1 = arith.constant 0 : i32
    return %arg0, %c0_i32, %c0_i32_0 : i32, i32, i32
  }
}

</mosaic_0001>

<bundles_post_ra>
// kernel: input_embedding.1
= control target key start
LH: loop header
LB: loop body
LE: loop exit
PB: predicated region body
PF: predicated region fallthrough
CT: control target
= control target key end

     0   :  { %s503_s18 = smov 0   ;;  %s535_s0 = inlined_call_operand.vmem [shape: bf16[2,16,48], index: 0, kind: input, shape index: {}]   ;;  %s536_s1 = inlined_call_operand.vmem [shape: bf16[32,48], index: 1, kind: input, shape index: {}]   ;;  %s537_s2 = inlined_call_operand.vmem [shape: f32[1,32], index: 2, kind: input, shape index: {}]   ;;  %s538_s3 = inlined_call_operand.vmem [shape: f32[2,1,32], index: 3, kind: input, shape index: {}]   ;;  %s539_s4 = inlined_call_operand.vmem [shape: f32[2,1,32], index: 4, kind: input, shape index: {}]   ;;  %s540_s5 = inlined_call_operand.vmem [shape: f32[2,17,32], index: 5, kind: output, shape index: {}]  }
   0x1 LB: > { %s422_s19 = sadd.s32 4294967295, %s469_s18   ;;  %p426_p0 = scmp.ge.s32.totalorder %s469_s18, 1  ;;  %s469_s18 = sphi %s503_s18, %s15_s18  }
   0x2   : > { %p203_p1 = scmp.lt.s32.totalorder %s469_s18, 3 }
   0x4   : > { %p204_p2 = pnand %p426_p0, %p203_p1 }
   0x5   : > { %v460_v0 = vld [vmem:[%s536_s1] sm:$0xff] (!%p204_p2)   ;;  %v471_v1 = vmov (!%p204_p2), 0.0   ;;  %vm283_vm0 = vcmask (!%p204_p2), 392192   ;;  %p237_p3 = scmp.lt.s32.totalorder (!%p204_p2), %s422_s19, 1  ;;  %vm472_vm1 = vmmov (!%p204_p2), 0   ;;  %v461_v3 = vld [vmem:[%s536_s1 + $0x8] sm:$0xff] (!%p204_p2)   ;;  %v335_v9 = vlaneseq (!%p204_p2) }
   0x6   : > { %207 = sbr.rel (%p204_p2) target bundleno = 241 (0xf1), region = 40  ;;  %441 = vmatprep.subr.bf16.mxu0 (!%p204_p2), %v471_v1  ;;  %v288_v2 = vsel (!%p204_p2), %vm283_vm0, %v460_v0, 0  ;;  %445 = vmatprep.mubr.msk.bf16.mxu0 (!%p204_p2), %vm472_vm1, %v471_v1  ;;  %v291_v4 = vsel (!%p204_p2), %vm283_vm0, %v461_v3, 0  ;;  %vm347_vm2 = vcmask (!%p204_p2), 253952   ;;  %v430_v12 = vld [vmem:[%s537_s2] ss:$0 sm:$0xff] (!%p204_p2) }
   0x7   : > { %442 = vmatpush3.bf16.xpose.msra.mxu0 (!%p204_p2), %v288_v2  ;;  %v336_v10 = vshrl.u32 (!%p204_p2), %v335_v9, 7  ;;  %vm342_vm3 = vcmask (!%p204_p2), 261120  }
   0x8   : > { %443 = vmatprep.subr.bf16.mxu0 (!%p204_p2), %v471_v1 }
   0x9   : > { %v337_v11 = vsub.s32 (!%p204_p2), 0, %v336_v10 }
   0xd   : > { %s542_s19 = smov (!%p237_p3, %s422_s19), 1 }
   0xe   : > { %s437_s24 = sshll.u32 %s542_s19, 3  ;;  %s244_s30 = scalar_lea.vmem %s538_s3, %s542_s19 }
   0xf   : > { %s241_s27 = scalar_lea.vmem %s535_s0, %s437_s24  ;;  %444 = vmatpush3.bf16.xpose.msra.mxu0 %v291_v4  ;;  %s247_s8 = scalar_lea.vmem %s539_s4, %s542_s19  ;;  %v345_v7 = vld [vmem:[%s244_s30] sm:$0x1] }
  0x10   : > { %v462_v5 = vld [vmem:[%s241_s27] sm:$0xff]   ;;  %s449_s9 = smul.u32 24, %s542_s19 }
  0x11   : > { %v255_v6 = vld [vmem:[%s247_s8] sm:$0x1] }
  0x12   : > { %v346_v8 = vadd.f32 %v345_v7, %v255_v6  ;;  %s252_s12 = scalar_lea.vmem %s540_s5, %s449_s9  ;;  %v338_v13 = vrot.slane %v255_v6, %v337_v11 }
  0x14   : > { %348 = vst.msk [vmem:[%s252_s12] sm:$0x1] %vm347_vm2, %v346_v8 }
  0x16   : > { %446 = vmatmul.mubr.msk.bf16.vlgmr.msra.gmra.mrb[0].mxu0 %vm283_vm0, %v462_v5 }
  0xe9   : > { %v327_v14 = vpop.f32.mrb[0].mxu0 }
  0xea   : > { %v328_v15 = vadd.f32 %v430_v12, %v327_v14  ;;  %v447_v16 = vpop.f32.mrb[1].mxu0 }
  0xeb   : > { %v330_v17 = vpop.f32.mrb[2].mxu0 }
  0xec   : > { %v340_v18 = vadd.f32 %v338_v13, %v328_v15  ;;  %v331_v19 = vadd.f32 %v430_v12, %v330_v17  ;;  %v448_v20 = vpop.f32.mrb[3].mxu0 }
  0xee   : > { %343 = vst.msk [vmem:[%s252_s12 + $0x1] sm:$0xff] %vm342_vm3, %v340_v18  ;;  %v341_v21 = vadd.f32 %v338_v13, %v331_v19 }
  0xf0   : > { %344 = vst.msk [vmem:[%s252_s12 + $0x9] sm:$0xff] %vm342_vm3, %v341_v21 }
  0xf1 PF: > { %s15_s18 = sadd.s32 1, %s469_s18  }
  0xf2   : > { %p12_p4 = scmp.ge.s32.totalorder %s15_s18, 4  }
  0xf4   :  { %14 = sbr.rel (!%p12_p4) target bundleno = 1 (0x1), region = 76 }

</bundles_post_ra>
